<compile_context>
chip_gen: v6e
topology: v6e:2x2x1
jax: 0.10.0
libtpu: 0.0.40
codegen_flags: <defaults>
</compile_context>

<pallas_src>
import functools

import jax
import jax.numpy as jnp
from jax.experimental import pallas as pl
from jax.experimental.pallas import tpu as pltpu


def _round_up(x, m):
    return (x + m - 1) // m * m


def _sublane_multiple(dtype):
    # Native sublane packing: f32 -> 8 rows, bf16 -> 16, int8/fp8 -> 32.
    return {4: 8, 2: 16, 1: 32}.get(jnp.dtype(dtype).itemsize, 8)


def _vmem_budget_bytes():
    # Generation-aware budget: ~80% of physical VMEM (~102 MiB on v5e/v6e,
    # ~51 MiB on v7x) leaving headroom for Mosaic internal scratch.  Falls
    # back to a v7x-safe assumption if the query is unavailable.
    try:
        cap = int(pltpu.get_tpu_info().vmem_capacity_bytes)
    except Exception:
        cap = 64 * 2**20
    return max(32 * 2**20, int(0.8 * cap))


def _pick_tile_rows(total_rows, align, per_row_bytes, fixed_bytes, budget, requested):
    """Largest sublane-aligned row tile that fits the padding-aware VMEM budget."""
    if total_rows <= align:
        return max(1, int(total_rows))          # single full-extent block (always legal)
    if requested is None:
        t = (budget - fixed_bytes) // max(1, per_row_bytes)
    else:
        t = int(requested)
    t = max(align, min(int(t), _round_up(total_rows, align)))
    t = t // align * align
    # Prefer >= 2 grid steps once there is enough work to amortize them:
    # shards across both TensorCores on v7x, overlaps DMA/compute elsewhere.
    if t >= total_rows and total_rows > 4 * align:
        t = max(align, _round_up(pl.cdiv(total_rows, 2), align))
    return int(t)


def _partials_to_loss(num_p, den_p):
    return jnp.sum(num_p[:, 0, 0]) / jnp.sum(den_p[:, 0, 0])


# ----------------------------------------------------------------------------
# Row-major (general) kernel: one (tile_rows, C) logits tile per grid step.
# ----------------------------------------------------------------------------
def _wce_rowmajor_kernel(logits_ref, target_ref, weight_ref, num_ref, den_ref,
                         *, n_rows, tile_rows):
    x = logits_ref[...].astype(jnp.float32)          # (T, C); cast AFTER the load
    tgt = target_ref[...]                            # (T, 1) int32
    w = weight_ref[...]                              # (1, C) f32, resident

    t, c = x.shape
    # Numerically stable per-row log-sum-exp.
    m = jnp.max(x, axis=-1, keepdims=True)
    lse = m + jnp.log(jnp.sum(jnp.exp(x - m), axis=-1, keepdims=True))     # (T, 1)

    # Ragged last tile: mask rows past the true batch (no wrapper-side pad).
    row = jax.lax.broadcasted_iota(jnp.int32, (t, 1), 0) + pl.program_id(0) * tile_rows
    valid = row < n_rows                                                    # (T, 1)
    col = jax.lax.broadcasted_iota(jnp.int32, (t, c), 1)
    hit = (col == tgt) & valid                                              # (T, C)

    # One-hot gathers, mask built once and reused.
    wy = jnp.sum(jnp.where(hit, w, 0.0), axis=-1, keepdims=True)            # w[y_i]
    xy = jnp.sum(jnp.where(hit, x, 0.0), axis=-1, keepdims=True)            # x_i[y_i]
    # Select (not multiply) so garbage rows in a ragged tile cannot leak NaN/Inf.
    per_row = jnp.where(valid, wy * (lse - xy), 0.0)

    num_ref[...] = jnp.broadcast_to(jnp.sum(per_row), num_ref.shape)
    den_ref[...] = jnp.broadcast_to(jnp.sum(wy), den_ref.shape)


def _loss_rowmajor(logits, target, class_weight, *, tile_rows):
    n, c = logits.shape
    itemsize = jnp.dtype(logits.dtype).itemsize
    align = _sublane_multiple(logits.dtype)
    lanes = _round_up(c, 128)
    budget = _vmem_budget_bytes()

    # Padding-aware accounting: 2x logits buffers (lanes padded to 128),
    # 2x int32 target buffers ((T,1) pads to (T,128)), ~4 f32 tile temps.
    per_row = 2 * lanes * itemsize + 2 * 128 * 4 + 4 * lanes * 4
    fixed = 4 * lanes * 4 + (1 << 20)

    tile_rows = _pick_tile_rows(n, align, per_row, fixed, budget, tile_rows)
    grid_n = pl.cdiv(n, tile_rows)
    vmem_limit = int(min(budget, max(32 * 2**20, fixed + per_row * tile_rows + (2 << 20))))

    target_2d = target.reshape(n, 1)               # free view reshape
    weight_2d = class_weight.reshape(1, c)

    kernel = functools.partial(_wce_rowmajor_kernel, n_rows=n, tile_rows=tile_rows)
    num_p, den_p = pl.pallas_call(
        kernel,
        out_shape=(jax.ShapeDtypeStruct((grid_n, 1, 128), jnp.float32),
                   jax.ShapeDtypeStruct((grid_n, 1, 128), jnp.float32)),
        grid_spec=pltpu.PrefetchScalarGridSpec(
            num_scalar_prefetch=0,
            grid=(grid_n,),
            in_specs=[
                pl.BlockSpec((tile_rows, c), lambda i: (i, 0)),   # logits tile
                pl.BlockSpec((tile_rows, 1), lambda i: (i, 0)),   # targets tile
                pl.BlockSpec((1, c), lambda i: (0, 0)),           # weight row, resident
            ],
            out_specs=[
                pl.BlockSpec((1, 1, 128), lambda i: (i, 0, 0)),
                pl.BlockSpec((1, 1, 128), lambda i: (i, 0, 0)),
            ],
        ),
        compiler_params=pltpu.CompilerParams(
            dimension_semantics=("parallel",),
            vmem_limit_bytes=vmem_limit,
        ),
    )(logits, target_2d, weight_2d)
    return _partials_to_loss(num_p, den_p)


# ----------------------------------------------------------------------------
# Lane-packed kernel for small C dividing 128: k = 128 // C samples per
# 128-lane row, so every VMEM tile is lane-dense.
# ----------------------------------------------------------------------------
def _wce_lanepacked_kernel(logits_ref, target_ref, wlane_ref, expand_ref, group_ref,
                           num_ref, den_ref, *, num_classes, n_rows, tile_rows):
    x = logits_ref[...].astype(jnp.float32)          # (T, 128)
    tgt = target_ref[...].astype(jnp.float32)        # (T, k) small ints, exact in f32
    wl = wlane_ref[...]                              # (1, 128) = w[lane % C]
    expand = expand_ref[...]                         # (k, 128) sample -> lane broadcast
    group = group_ref[...]                           # (128, 128) same-sample indicator

    t, width = x.shape
    lane = jax.lax.broadcasted_iota(jnp.int32, (1, width), 1)
    cls = (lane % num_classes).astype(jnp.float32)                  # class of each lane
    gid = (lane // num_classes).astype(jnp.float32)                 # sample-group of each lane

    # Per-sample (segmented) max over each group of C adjacent lanes: a
    # direction-agnostic rotate tree on the XLU; cross-group lanes are masked
    # by rolling the group-id alongside the data.
    m = x
    s = 1
    while s < num_classes:
        for sh in (s, width - s):                    # both rotation directions
            mr = pltpu.roll(m, sh, axis=1)
            gr = pltpu.roll(gid, sh, axis=1)
            m = jnp.maximum(m, jnp.where(gr == gid, mr, -jnp.inf))
        s *= 2

    # Per-sample sum of exp(x - m), broadcast back to its C lanes via one MXU
    # matmul (free under the DMA), then the per-sample LSE at every lane.
    e = jnp.exp(x - m)                                               # <= 1, no overflow
    ssum = jnp.dot(e, group, preferred_element_type=jnp.float32)     # (T, 128)
    lse = m + jnp.log(ssum)

    # One-hot gather: expand per-sample targets to per-lane target ids (MXU),
    # mask ragged packed-row tiles against the true packed-row count.
    tgt_lane = jnp.dot(tgt, expand, preferred_element_type=jnp.float32)   # (T, 128)
    row = jax.lax.broadcasted_iota(jnp.int32, (t, 1), 0) + pl.program_id(0) * tile_rows
    valid = row < n_rows                                                  # (T, 1)
    hit = (tgt_lane == cls) & valid                                       # (T, 128)

    num_ref[...] = jnp.broadcast_to(
        jnp.sum(jnp.where(hit, wl * (lse - x), 0.0)), num_ref.shape)
    den_ref[...] = jnp.broadcast_to(
        jnp.sum(jnp.where(hit, wl, 0.0)), den_ref.shape)


def _loss_lanepacked(logits, target, class_weight, *, tile_rows):
    n, c = logits.shape
    k = 128 // c
    width = k * c                                   # == 128
    r = n // k                                      # packed rows
    itemsize = jnp.dtype(logits.dtype).itemsize
    align = _sublane_multiple(logits.dtype)
    budget = _vmem_budget_bytes()

    # 2x logits buffers, 2x int32 target buffers ((T,k) pads to (T,128)),
    # ~8 f32 tile temps (cast copy, roll/max temps, exp, matmul outputs, masks).
    per_row = 2 * width * itemsize + 2 * 128 * 4 + 8 * width * 4
    fixed = 2 * (width * width + _round_up(k, 8) * width + width) * 4 + (2 << 20)

    tile_rows = _pick_tile_rows(r, align, per_row, fixed, budget, tile_rows)
    grid_n = pl.cdiv(r, tile_rows)
    vmem_limit = int(min(budget, max(32 * 2**20, fixed + per_row * tile_rows + (2 << 20))))

    # Free row-major view reshapes: (N, C) -> (N//k, 128), (N,) -> (N//k, k).
    logits_p = logits.reshape(r, width)
    target_p = target.reshape(r, k)
    wlane = jnp.tile(class_weight, (k,)).reshape(1, width)
    gid = jnp.arange(width, dtype=jnp.int32) // c
    group = (gid[:, None] == gid[None, :]).astype(jnp.float32)                    # (128, 128)
    expand = (jnp.arange(k, dtype=jnp.int32)[:, None] == gid[None, :]).astype(jnp.float32)  # (k, 128)

    kernel = functools.partial(_wce_lanepacked_kernel, num_classes=c,
                               n_rows=r, tile_rows=tile_rows)
    num_p, den_p = pl.pallas_call(
        kernel,
        out_shape=(jax.ShapeDtypeStruct((grid_n, 1, 128), jnp.float32),
                   jax.ShapeDtypeStruct((grid_n, 1, 128), jnp.float32)),
        grid_spec=pltpu.PrefetchScalarGridSpec(
            num_scalar_prefetch=0,
            grid=(grid_n,),
            in_specs=[
                pl.BlockSpec((tile_rows, width), lambda i: (i, 0)),  # packed logits
                pl.BlockSpec((tile_rows, k), lambda i: (i, 0)),      # packed targets
                pl.BlockSpec((1, width), lambda i: (0, 0)),          # per-lane weights
                pl.BlockSpec((k, width), lambda i: (0, 0)),          # expand matrix
                pl.BlockSpec((width, width), lambda i: (0, 0)),      # group-sum matrix
            ],
            out_specs=[
                pl.BlockSpec((1, 1, 128), lambda i: (i, 0, 0)),
                pl.BlockSpec((1, 1, 128), lambda i: (i, 0, 0)),
            ],
        ),
        compiler_params=pltpu.CompilerParams(
            dimension_semantics=("parallel",),
            vmem_limit_bytes=vmem_limit,
        ),
    )(logits_p, target_p, wlane, expand, group)
    return _partials_to_loss(num_p, den_p)


# ----------------------------------------------------------------------------
# Public wrapper (mirrors WeightedSoftmax.forward(output, target)).
# ----------------------------------------------------------------------------
@functools.partial(jax.jit, static_argnames=("tile_rows",))
def weighted_softmax_loss(logits, target, sample_per_class, *, tile_rows=None):
    n, c = logits.shape
    spc = sample_per_class.astype(jnp.float32)
    class_weight = spc.sum() / spc                      # (C,)
    target = target.astype(jnp.int32)

    k = 128 // c if c >= 1 else 0
    lane_packable = (1 <= c <= 64) and (128 % c == 0) and (k >= 2) and (n % k == 0)
    if lane_packable:
        return _loss_lanepacked(logits, target, class_weight, tile_rows=tile_rows)
    return _loss_rowmajor(logits, target, class_weight, tile_rows=tile_rows)


def _reference(logits, target, sample_per_class):
    w = sample_per_class.astype(jnp.float32)
    w = w.sum() / w
    x = logits.astype(jnp.float32)
    m = jnp.max(x, axis=-1)
    lse = m + jnp.log(jnp.sum(jnp.exp(x - m[:, None]), axis=-1))
    nll = lse - x[jnp.arange(x.shape[0]), target]
    return jnp.sum(w[target] * nll) / jnp.sum(w[target])


if __name__ == "__main__":
    key = jax.random.PRNGKey(0)
    ks = jax.random.split(key, 8)
    C = 4
    spc = jnp.array([10.0, 20.0, 30.0, 40.0], dtype=jnp.float32)

    def check(logits, target, tol=1e-5, **kw):
        loss = weighted_softmax_loss(logits, target, spc, **kw)
        jax.block_until_ready(loss)
        ref = _reference(logits, target, spc)
        assert jnp.allclose(loss, ref, rtol=tol, atol=tol), (loss, ref)

    # 1) Tiny batch: row-major path, single full block, no padding anywhere.
    x1 = jax.random.normal(ks[0], (8, C), dtype=jnp.float32)
    y1 = jax.random.randint(ks[1], (8,), 0, C, dtype=jnp.int32)
    check(x1, y1)

    # 2) Row-major path with several grid steps and a ragged last tile (20 = 8+8+4).
    x2 = jax.random.normal(ks[2], (20, C), dtype=jnp.float32)
    y2 = jax.random.randint(ks[3], (20,), 0, C, dtype=jnp.int32)
    check(x2, y2, tile_rows=8)

    # 3) Lane-packed path (k=32 samples per 128-lane row): 640 samples -> 20
    #    packed rows, tile 8 -> 3 grid steps with a ragged last packed tile.
    x3 = jax.random.normal(ks[4], (640, C), dtype=jnp.float32)
    y3 = jax.random.randint(ks[5], (640,), 0, C, dtype=jnp.int32)
    check(x3, y3, tile_rows=8)

    # 4) Lane-packed path with bf16 logits (native-dtype DMA, f32 math in-kernel).
    x4 = jax.random.normal(ks[6], (1024, C), dtype=jnp.float32).astype(jnp.bfloat16)
    y4 = jax.random.randint(ks[7], (1024,), 0, C, dtype=jnp.int32)
    check(x4, y4, tol=1e-4)

    print("KERNEL_OK")
</pallas_src>

<mosaic_0001>
module attributes {stable_mosaic.version = 11 : i64} {
  func.func @_wce_rowmajor_kernel(%arg0: i32, %arg1: memref<8x4xf32, #tpu.memory_space<vmem>>, %arg2: memref<8x1xi32, #tpu.memory_space<vmem>>, %arg3: memref<1x4xf32, #tpu.memory_space<vmem>>, %arg4: memref<1x1x128xf32, #tpu.memory_space<vmem>>, %arg5: memref<1x1x128xf32, #tpu.memory_space<vmem>>) attributes {dimension_semantics = [#tpu.dimension_semantics<parallel>], iteration_bounds = array<i64: 1>, scalar_prefetch = 0 : i64, scratch_operands = 0 : i64, tpu.core_type = #tpu.core_type<tc>, window_params = [{transform_indices = @transform_0, window_bounds = array<i64: 8, 4>}, {transform_indices = @transform_1, window_bounds = array<i64: 8, 1>}, {pipeline_mode = #tpu.pipeline_mode<synchronous>, transform_indices = @transform_2, window_bounds = array<i64: 1, 4>}, {transform_indices = @transform_3, window_bounds = array<i64: 1, 1, 128>}, {transform_indices = @transform_4, window_bounds = array<i64: 1, 1, 128>}]} {
    %c0 = arith.constant 0 : index
    %c0_0 = arith.constant 0 : index
    %0 = vector.load %arg1[%c0, %c0_0] : memref<8x4xf32, #tpu.memory_space<vmem>>, vector<8x4xf32>
    %c0_1 = arith.constant 0 : index
    %c0_2 = arith.constant 0 : index
    %1 = vector.load %arg2[%c0_1, %c0_2] : memref<8x1xi32, #tpu.memory_space<vmem>>, vector<8x1xi32>
    %c0_3 = arith.constant 0 : index
    %c0_4 = arith.constant 0 : index
    %2 = vector.load %arg3[%c0_3, %c0_4] : memref<1x4xf32, #tpu.memory_space<vmem>>, vector<1x4xf32>
    %cst = arith.constant dense<0xFF800000> : vector<8xf32>
    %3 = vector.multi_reduction <maximumf>, %0, %cst [1] : vector<8x4xf32> to vector<8xf32>
    %4 = vector.shape_cast %3 : vector<8xf32> to vector<8x1xf32>
    %5 = vector.broadcast %4 : vector<8x1xf32> to vector<8x4xf32>
    %6 = arith.subf %0, %5 : vector<8x4xf32>
    %7 = math.exp %6 : vector<8x4xf32>
    %cst_5 = arith.constant dense<0.000000e+00> : vector<8xf32>
    %8 = vector.multi_reduction <add>, %7, %cst_5 [1] : vector<8x4xf32> to vector<8xf32>
    %9 = vector.shape_cast %8 : vector<8xf32> to vector<8x1xf32>
    %10 = math.log %9 : vector<8x1xf32>
    %11 = arith.addf %4, %10 : vector<8x1xf32>
    %12 = tpu.iota {dimensions = array<i32: 0>} : vector<8x1xi32>
    %c8_i32 = arith.constant 8 : i32
    %13 = arith.muli %arg0, %c8_i32 : i32
    %14 = vector.broadcast %13 : i32 to vector<8x1xi32>
    %15 = arith.addi %12, %14 : vector<8x1xi32>
    %c8_i32_6 = arith.constant 8 : i32
    %16 = vector.broadcast %c8_i32_6 : i32 to vector<8x1xi32>
    %17 = arith.cmpi slt, %15, %16 : vector<8x1xi32>
    %18 = tpu.iota {dimensions = array<i32: 1>} : vector<8x4xi32>
    %19 = vector.broadcast %1 : vector<8x1xi32> to vector<8x4xi32>
    %20 = arith.cmpi eq, %18, %19 : vector<8x4xi32>
    %21 = vector.broadcast %17 : vector<8x1xi1> to vector<8x4xi1>
    %22 = arith.andi %20, %21 : vector<8x4xi1>
    %cst_7 = arith.constant 0.000000e+00 : f32
    %23 = vector.shape_cast %2 : vector<1x4xf32> to vector<1x4xf32>
    %24 = vector.broadcast %23 : vector<1x4xf32> to vector<8x4xf32>
    %25 = vector.broadcast %cst_7 : f32 to vector<8x4xf32>
    %26 = arith.select %22, %24, %25 : vector<8x4xi1>, vector<8x4xf32>
    %cst_8 = arith.constant dense<0.000000e+00> : vector<8xf32>
    %27 = vector.multi_reduction <add>, %26, %cst_8 [1] : vector<8x4xf32> to vector<8xf32>
    %28 = vector.shape_cast %27 : vector<8xf32> to vector<8x1xf32>
    %cst_9 = arith.constant 0.000000e+00 : f32
    %29 = vector.broadcast %cst_9 : f32 to vector<8x4xf32>
    %30 = arith.select %22, %0, %29 : vector<8x4xi1>, vector<8x4xf32>
    %cst_10 = arith.constant dense<0.000000e+00> : vector<8xf32>
    %31 = vector.multi_reduction <add>, %30, %cst_10 [1] : vector<8x4xf32> to vector<8xf32>
    %32 = vector.shape_cast %31 : vector<8xf32> to vector<8x1xf32>
    %33 = arith.subf %11, %32 : vector<8x1xf32>
    %34 = arith.mulf %28, %33 : vector<8x1xf32>
    %cst_11 = arith.constant 0.000000e+00 : f32
    %35 = vector.broadcast %cst_11 : f32 to vector<8x1xf32>
    %36 = arith.select %17, %34, %35 : vector<8x1xi1>, vector<8x1xf32>
    %37 = vector.shape_cast %36 : vector<8x1xf32> to vector<1x8x1xf32>
    %cst_12 = arith.constant dense<0.000000e+00> : vector<1xf32>
    %38 = vector.multi_reduction <add>, %37, %cst_12 [1, 2] : vector<1x8x1xf32> to vector<1xf32>
    %39 = vector.shape_cast %38 : vector<1xf32> to vector<1x1x1xf32>
    %40 = vector.extract %39[0, 0, 0] : f32 from vector<1x1x1xf32>
    %41 = vector.broadcast %40 : f32 to vector<1x1x128xf32>
    %c0_13 = arith.constant 0 : index
    %c0_14 = arith.constant 0 : index
    %c0_15 = arith.constant 0 : index
    %42 = vector.load %arg4[%c0_13, %c0_14, %c0_15] : memref<1x1x128xf32, #tpu.memory_space<vmem>>, vector<1x1x128xf32>
    tpu.vector_store %arg4[%c0_13, %c0_14, %c0_15], %41 {strides = array<i32>} : memref<1x1x128xf32, #tpu.memory_space<vmem>>, vector<1x1x128xf32>,
    %43 = vector.shape_cast %28 : vector<8x1xf32> to vector<1x8x1xf32>
    %cst_16 = arith.constant dense<0.000000e+00> : vector<1xf32>
    %44 = vector.multi_reduction <add>, %43, %cst_16 [1, 2] : vector<1x8x1xf32> to vector<1xf32>
    %45 = vector.shape_cast %44 : vector<1xf32> to vector<1x1x1xf32>
    %46 = vector.extract %45[0, 0, 0] : f32 from vector<1x1x1xf32>
    %47 = vector.broadcast %46 : f32 to vector<1x1x128xf32>
    %c0_17 = arith.constant 0 : index
    %c0_18 = arith.constant 0 : index
    %c0_19 = arith.constant 0 : index
    %48 = vector.load %arg5[%c0_17, %c0_18, %c0_19] : memref<1x1x128xf32, #tpu.memory_space<vmem>>, vector<1x1x128xf32>
    tpu.vector_store %arg5[%c0_17, %c0_18, %c0_19], %47 {strides = array<i32>} : memref<1x1x128xf32, #tpu.memory_space<vmem>>, vector<1x1x128xf32>,
    return
  }
  func.func @transform_0(%arg0: i32) -> (i32, i32) {
    %c0_i32 = arith.constant 0 : i32
    %c0_i32_0 = arith.constant 0 : i32
    return %arg0, %c0_i32 : i32, i32
  }
  func.func @transform_1(%arg0: i32) -> (i32, i32) {
    %c0_i32 = arith.constant 0 : i32
    %c0_i32_0 = arith.constant 0 : i32
    return %arg0, %c0_i32 : i32, i32
  }
  func.func @transform_2(%arg0: i32) -> (i32, i32) {
    %c0_i32 = arith.constant 0 : i32
    %c0_i32_0 = arith.constant 0 : i32
    %c0_i32_1 = arith.constant 0 : i32
    return %c0_i32, %c0_i32_0 : i32, i32
  }
  func.func @transform_3(%arg0: i32) -> (i32, i32, i32) {
    %c0_i32 = arith.constant 0 : i32
    %c0_i32_0 = arith.constant 0 : i32
    %c0_i32_1 = arith.constant 0 : i32
    return %arg0, %c0_i32, %c0_i32_0 : i32, i32, i32
  }
  func.func @transform_4(%arg0: i32) -> (i32, i32, i32) {
    %c0_i32 = arith.constant 0 : i32
    %c0_i32_0 = arith.constant 0 : i32
    %c0_i32_1 = arith.constant 0 : i32
    return %arg0, %c0_i32, %c0_i32_0 : i32, i32, i32
  }
}

</mosaic_0001>

<bundles_post_ra>
// kernel: weighted_softmax_loss.1
= control target key start
LH: loop header
LB: loop body
LE: loop exit
PB: predicated region body
PF: predicated region fallthrough
CT: control target
= control target key end

     0   :  { %vm19_vm0 = vcmask 31744   ;;  %v108_v1 = vmov 0   ;;  %v38_v7 = vlaneseq  ;;  %vm64_vm2 = vcmask 7168   ;;  %s153_s0 = inlined_call_operand.vmem [shape: f32[8,4], index: 0, kind: input, shape index: {}]   ;;  %s154_s1 = inlined_call_operand.vmem [shape: s32[8,1], index: 1, kind: input, shape index: {}]   ;;  %s155_s2 = inlined_call_operand.vmem [shape: f32[1,4], index: 2, kind: input, shape index: {}]   ;;  %s156_s3 = inlined_call_operand.vmem [shape: f32[1,1,128], index: 3, kind: output, shape index: {0}]   ;;  %s157_s4 = inlined_call_operand.vmem [shape: f32[1,1,128], index: 4, kind: output, shape index: {1}]  }
   0x1   :  { %v16_v0 = vld [vmem:[%s153_s0] sm:$0xff]  ;;  %103 = vset.pattern.permute.xlu0 %v108_v1 }
   0x2   :  { %v20_v2 = vsel %vm19_vm0, %v16_v0, -inf  ;;  %v17_v3 = vld [vmem:[%s154_s1] sm:$0xff]  ;;  %v39_v8 = vand.u32 127, %v38_v7 }
   0x3   :  { %21 = vmax.xlane.f32.xlu0 %v20_v2  ;;  %v97_v13 = vld [vmem:[%s155_s2] ss:$0 sm:$0xff] }
  0x19   :  { %41 = vperm.xlu0 %103, %v17_v3  }
  0x8c   :  { %v22_v4 = vpop.xlane.xlu0 %21 }
  0x8d   :  { %v23_v5 = vsub.f32 %v16_v0, %v22_v4 }
  0x8f   :  { %v24_v6 = vmul.f32 1.442695, %v23_v5 }
  0x91   :  { %104 = vpow2.f32 %v24_v6 }
  0x94   :  { %v42_v9 = vpop.permute.xlu0 %41 }
  0x95   :  { %vm43_vm1 = vcmp.eq.s32.totalorder %v39_v8, %v42_v9 }
  0x96   :  { %v57_v11 = vsel %vm43_vm1, %v16_v0, 0.0  ;;  %v53_v15 = vsel %vm43_vm1, %v97_v13, 0.0 }
  0x97   :  { %v58_v14 = vsel %vm19_vm0, %v57_v11, 0.0  ;;  %v54_v16 = vsel %vm19_vm0, %v53_v15, 0.0 }
  0x9e   :  { %v105_v10 = vpop.eup %104 }
  0x9f   :  { %v26_v12 = vsel %vm19_vm0, %v105_v10, 0.0 }
  0xa0   :  { %27 = vadd.xlane.f32.xlu1 %v26_v12 }
  0xa4   :  { %59 = vadd.xlane.f32.xlu1 %v58_v14 }
  0xa8   :  { %55 = vadd.xlane.f32.xlu1 %v54_v16 }
 0x129   :  { %v28_v17 = vpop.xlane.xlu1 %27 }
 0x12a   :  { %106 = vlog2.f32 %v28_v17 }
 0x12d   :  { %v60_v19 = vpop.xlane.xlu1 %59 }
 0x131   :  { %v56_v23 = vpop.xlane.xlu1 %55 }
 0x132   :  { %v77_v26 = vsel %vm64_vm2, %v56_v23, 0.0 }
 0x137   :  { %v107_v18 = vpop.eup %106 }
 0x138   :  { %v30_v20 = vmul.f32 0.6931472, %v107_v18 }
 0x13a   :  { %v31_v21 = vadd.f32 %v30_v20, %v22_v4 }
 0x13c   :  { %v61_v22 = vsub.f32 %v31_v21, %v60_v19 }
 0x13e   :  { %v62_v24 = vmul.f32 %v61_v22, %v56_v23 }
 0x140   :  { %v65_v25 = vsel %vm64_vm2, %v62_v24, 0.0 }
 0x141   :  { %66 = vadd.xlane.f32.xlu1 %v65_v25 }
 0x145   :  { %78 = vadd.xlane.f32.xlu1 %v77_v26 }
 0x1ca   :  { %v67_v27 = vpop.xlane.xlu1 %66 }
 0x1cb   :  { %v68_v28 = vrot.slane %v67_v27, 4 }
 0x1cd   :  { %v69_v29 = vadd.f32 %v68_v28, %v67_v27 }
 0x1ce   :  { %v79_v30 = vpop.xlane.xlu1 %78 }
 0x1cf   :  { %v70_v31 = vrot.slane %v69_v29, 2  ;;  %v80_v32 = vrot.slane %v79_v30, 4 }
 0x1d1   :  { %v81_v33 = vadd.f32 %v80_v32, %v79_v30  ;;  %v71_v34 = vadd.f32 %v70_v31, %v69_v29 }
 0x1d3   :  { %v82_v35 = vrot.slane %v81_v33, 2  ;;  %v72_v36 = vrot.slane %v71_v34, 1 }
 0x1d5   :  { %v83_v37 = vadd.f32 %v82_v35, %v81_v33  ;;  %v73_v38 = vadd.f32 %v72_v36, %v71_v34 }
 0x1d7   :  { %98 = vpush %v73_v38  ;;  %v84_v39 = vrot.slane %v83_v37, 1 }
 0x1d9   :  { %v85_v40 = vadd.f32 %v84_v39, %v83_v37 }
 0x1db   :  { %100 = vpush %v85_v40 }
 0x208   :  { %s99_s1 = spop %98 }
 0x209   :  { %v75_v41 = vstv %s99_s1 }
 0x20a   :  { %76 = vst [vmem:[%s156_s3] sm:$0x1] %v75_v41 }
 0x20c   :  { %s101_s21 = spop %100 }
 0x20d   :  { %v87_v42 = vstv %s101_s21 }
 0x20e   :  { %88 = vst [vmem:[%s157_s4] sm:$0x1] %v87_v42 }

</bundles_post_ra>
